<compile_context>
chip_gen: v7x
topology: tpu7x:2x2x1
jax: 0.10.0
libtpu: 0.0.40
codegen_flags: <defaults>
</compile_context>

<pallas_src>
import functools

import jax
import jax.numpy as jnp
from jax.experimental import pallas as pl
from jax.experimental.pallas import tpu as pltpu

_LANE = 128
_SUBLANE = 8
_FAST_PATH_BYTES = 1 * 1024 * 1024    # below this, plain jnp beats a kernel launch


def _round_up(x, m):
    return ((x + m - 1) // m) * m


def _vmem_budgets():
    """(input-tile budget, scoped vmem limit) derived from hardware VMEM size."""
    try:
        cap = int(pltpu.get_tpu_info().vmem_capacity_bytes)
    except Exception:
        cap = 64 * 1024 * 1024        # conservative fallback: v7x per-TC VMEM
    cap = max(cap, 32 * 1024 * 1024)
    return (3 * cap) // 10, (6 * cap) // 10


def _choose_tiles(R, C, itemsize, budget):
    """Pick (TR, TC) so double-buffered tiles fit `budget`.

    Lane-padded VMEM accounting per row of a tile:
      inputs  : 2 arrays * 2 buffers * round_up(TC,128) * itemsize
      weights : 2 buffers * 128 * 4   (a (TR,1) f32 block pads to 128 lanes)
      acc     : 128 * 4               (row-sum scratch, single buffer)
    """
    R_pad = _round_up(R, _SUBLANE)
    C_pad = _round_up(C, _LANE)
    per_row_overhead = 2 * _LANE * 4 + _LANE * 4

    # First try: full-width tiles (no column tiling).
    bytes_per_row = 2 * 2 * C_pad * itemsize + per_row_overhead
    tr = (budget // bytes_per_row) // _SUBLANE * _SUBLANE
    if tr >= _SUBLANE:
        tr = min(tr, R_pad)
        # Megacore: keep >=2 (prefer 4) row tiles so both v7x TCs stream HBM.
        if R_pad >= 4 * _SUBLANE:
            tr = min(tr, _round_up(pl.cdiv(R_pad, 4), _SUBLANE))
        elif R_pad >= 2 * _SUBLANE:
            tr = min(tr, _round_up(pl.cdiv(R_pad, 2), _SUBLANE))
        return int(tr), int(C)

    # Very wide rows: minimal row tile, tile the column axis instead.
    tr = _SUBLANE
    col_budget = max(budget - tr * per_row_overhead, 2 * 2 * tr * _LANE * itemsize)
    tc = (col_budget // (2 * 2 * tr * itemsize)) // _LANE * _LANE
    tc = int(max(_LANE, min(tc, C_pad)))
    return int(tr), tc


def _wmse_kernel(y_ref, yhat_ref, w_ref, out_ref, acc_ref, *, R, C, TR, TC):
    """Accumulate per-row sums over column tiles; finalize on the last one."""
    i = pl.program_id(0)
    j = pl.program_id(1)
    nj = pl.num_programs(1)

    @pl.when(j == 0)
    def _():
        acc_ref[...] = jnp.zeros_like(acc_ref)

    # Widen to f32 in-kernel (inputs stream in native dtype, e.g. bf16).
    diff = y_ref[...].astype(jnp.float32) - yhat_ref[...].astype(jnp.float32)  # (TR, TC)

    if C % TC != 0:
        # Only the last column tile can contain out-of-range (garbage) columns.
        @pl.when(j == nj - 1)
        def _():
            col_ids = j * TC + jax.lax.broadcasted_iota(jnp.int32, (TR, TC), 1)
            acc_ref[...] += jnp.sum(
                jnp.where(col_ids < C, diff, jnp.float32(0.0)),
                axis=-1, keepdims=True)

        @pl.when(j != nj - 1)
        def _():
            acc_ref[...] += jnp.sum(diff, axis=-1, keepdims=True)
    else:
        acc_ref[...] += jnp.sum(diff, axis=-1, keepdims=True)

    @pl.when(j == nj - 1)
    def _():
        row_sum = acc_ref[...]                                          # (TR, 1)
        weighted = row_sum * row_sum * w_ref[...].astype(jnp.float32)   # (TR, 1)

        if R % TR != 0:
            ni = pl.num_programs(0)

            # Only the last row tile can contain out-of-range (garbage) rows.
            @pl.when(i == ni - 1)
            def _():
                row_ids = i * TR + jax.lax.broadcasted_iota(jnp.int32, (TR, 1), 0)
                masked = jnp.where(row_ids < R, weighted, jnp.float32(0.0))
                out_ref[...] = jnp.broadcast_to(jnp.sum(masked), (_SUBLANE, _LANE))

            @pl.when(i != ni - 1)
            def _():
                out_ref[...] = jnp.broadcast_to(jnp.sum(weighted), (_SUBLANE, _LANE))
        else:
            out_ref[...] = jnp.broadcast_to(jnp.sum(weighted), (_SUBLANE, _LANE))


def weighted_mse_sum(Y, Yhats, weights, *, force_pallas=False, tile_override=None):
    """Y, Yhats: (R, C) (f32 or bf16); weights: (R,). Returns scalar f32."""
    R, C = Y.shape
    assert Yhats.shape == (R, C)
    assert weights.shape == (R,)

    y_bytes = jnp.dtype(Y.dtype).itemsize
    yh_bytes = jnp.dtype(Yhats.dtype).itemsize
    itemsize = max(y_bytes, yh_bytes)
    in_bytes = R * C * (y_bytes + yh_bytes) + R * 4

    if not force_pallas and in_bytes <= _FAST_PATH_BYTES:
        # Tiny inputs (the module's typical call sites): a kernel launch and the
        # partials round trip would dominate; XLA fuses this into a few VPU ops.
        diff = Y.astype(jnp.float32) - Yhats.astype(jnp.float32)
        row_sum = jnp.sum(diff, axis=-1)
        return jnp.sum(row_sum * row_sum * weights.astype(jnp.float32)) / jnp.float32(R * C * C)

    budget, vmem_limit = _vmem_budgets()
    if tile_override is not None:
        TR, TC = tile_override
    else:
        TR, TC = _choose_tiles(R, C, itemsize, budget)
    G_rows = pl.cdiv(R, TR)
    G_cols = pl.cdiv(C, TC)

    w2d = weights.reshape(R, 1).astype(jnp.float32)   # tiny f32 parameter
    kernel = functools.partial(_wmse_kernel, R=R, C=C, TR=TR, TC=TC)

    cost = pl.CostEstimate(
        flops=3 * R * C,
        transcendentals=0,
        bytes_accessed=R * C * (y_bytes + yh_bytes) + R * 4 + G_rows * _SUBLANE * _LANE * 4,
    )

    partial_tiles = pl.pallas_call(
        kernel,
        out_shape=jax.ShapeDtypeStruct((G_rows * _SUBLANE, _LANE), jnp.float32),
        grid=(G_rows, G_cols),
        in_specs=[
            pl.BlockSpec((TR, TC), lambda i, j: (i, j)),
            pl.BlockSpec((TR, TC), lambda i, j: (i, j)),
            pl.BlockSpec((TR, 1), lambda i, j: (i, 0)),
        ],
        out_specs=pl.BlockSpec((_SUBLANE, _LANE), lambda i, j: (i, 0)),
        scratch_shapes=[pltpu.VMEM((TR, 1), jnp.float32)],
        compiler_params=pltpu.CompilerParams(
            dimension_semantics=("parallel", "arbitrary"),
            vmem_limit_bytes=int(vmem_limit),
        ),
        cost_estimate=cost,
    )(Y, Yhats, w2d)

    # One representative element per row tile (all 8x128 elements of a tile
    # hold the same partial), then apply 1/(R*C*C) exactly once:
    # 1/C for the column mean (squared -> 1/C^2) and 1/R for the row mean.
    partials = partial_tiles.reshape(G_rows, _SUBLANE * _LANE)[:, 0]
    return jnp.sum(partials) / jnp.float32(R * C * C)


def _reference(Y, Yhats, weights):
    Yf = Y.astype(jnp.float32)
    Yhf = Yhats.astype(jnp.float32)
    sum_error = jnp.mean(Yf - Yhf, axis=-1)
    row_error = jnp.square(sum_error)
    return jnp.mean(row_error * weights.astype(jnp.float32))


if __name__ == "__main__":
    key = jax.random.PRNGKey(0)
    keys = jax.random.split(key, 9)

    # 1) Module-typical small shape: Y is 2-D, weights has Y.shape[0] entries
    #    (torch.rand -> uniform [0, 1)).  Goes through the tiny-shape fast path.
    R, C = 8, 16
    Y = jax.random.normal(keys[0], (R, C), dtype=jnp.float32)
    Yhats = jax.random.normal(keys[1], (R, C), dtype=jnp.float32)
    msesum_weights = jax.random.uniform(keys[2], (R,), dtype=jnp.float32)

    result = jax.block_until_ready(weighted_mse_sum(Y, Yhats, msesum_weights))
    ref = _reference(Y, Yhats, msesum_weights)
    assert jnp.allclose(result, ref, atol=1e-6, rtol=1e-6), (result, ref)

    # 2) Force the Pallas path with auto tiling (full-width column tile,
    #    multiple row tiles on the parallel axis), f32.
    R2, C2 = 256, 512
    Y2 = jax.random.normal(keys[3], (R2, C2), dtype=jnp.float32)
    Yhats2 = jax.random.normal(keys[4], (R2, C2), dtype=jnp.float32)
    w2 = jax.random.uniform(keys[5], (R2,), dtype=jnp.float32)

    result2 = jax.block_until_ready(weighted_mse_sum(Y2, Yhats2, w2, force_pallas=True))
    ref2 = _reference(Y2, Yhats2, w2)
    assert jnp.allclose(result2, ref2, atol=1e-6, rtol=1e-4), (result2, ref2)

    # 3) Force the Pallas path with bf16 inputs, row tail (R % TR != 0),
    #    column tiling and column tail (C % TC != 0) via a small tile override.
    R3, C3 = 20, 300
    Y3 = jax.random.normal(keys[6], (R3, C3), dtype=jnp.float32).astype(jnp.bfloat16)
    Yhats3 = jax.random.normal(keys[7], (R3, C3), dtype=jnp.float32).astype(jnp.bfloat16)
    w3 = jax.random.uniform(keys[8], (R3,), dtype=jnp.float32)

    result3 = jax.block_until_ready(
        weighted_mse_sum(Y3, Yhats3, w3, force_pallas=True, tile_override=(8, 128)))
    ref3 = _reference(Y3, Yhats3, w3)
    assert jnp.allclose(result3, ref3, atol=1e-5, rtol=1e-4), (result3, ref3)

    print("KERNEL_OK")
</pallas_src>

<mosaic_0001>
module attributes {stable_mosaic.version = 11 : i64} {
  func.func @_wmse_kernel(%arg0: i32, %arg1: i32, %arg2: memref<64x512xf32, #tpu.memory_space<vmem>>, %arg3: memref<64x512xf32, #tpu.memory_space<vmem>>, %arg4: memref<64x1xf32, #tpu.memory_space<vmem>>, %arg5: memref<8x128xf32, #tpu.memory_space<vmem>>, %arg6: memref<64x1xf32, #tpu.memory_space<vmem>>) attributes {dimension_semantics = [#tpu.dimension_semantics<parallel>, #tpu.dimension_semantics<arbitrary>], iteration_bounds = array<i64: 4, 1>, scalar_prefetch = 0 : i64, scratch_operands = 1 : i64, tpu.core_type = #tpu.core_type<tc>, window_params = [{transform_indices = @transform_0, window_bounds = array<i64: 64, 512>}, {transform_indices = @transform_1, window_bounds = array<i64: 64, 512>}, {transform_indices = @transform_2, window_bounds = array<i64: 64, 1>}, {transform_indices = @transform_3, window_bounds = array<i64: 8, 128>}]} {
    %c0_i32 = arith.constant 0 : i32
    %0 = arith.cmpi eq, %arg1, %c0_i32 : i32
    %1 = arith.extui %0 : i1 to i32
    %c0_i32_0 = arith.constant 0 : i32
    %2 = arith.cmpi ne, %1, %c0_i32_0 : i32
    scf.if %2 {
      %cst_10 = arith.constant 0.000000e+00 : f32
      %14 = vector.broadcast %cst_10 : f32 to vector<64x1xf32>
      %c0_11 = arith.constant 0 : index
      %c0_12 = arith.constant 0 : index
      %15 = vector.load %arg6[%c0_11, %c0_12] : memref<64x1xf32, #tpu.memory_space<vmem>>, vector<64x1xf32>
      tpu.vector_store %arg6[%c0_11, %c0_12], %14 {strides = array<i32>} : memref<64x1xf32, #tpu.memory_space<vmem>>, vector<64x1xf32>,
    } else {
    }
    %c0 = arith.constant 0 : index
    %c0_1 = arith.constant 0 : index
    %3 = vector.load %arg2[%c0, %c0_1] : memref<64x512xf32, #tpu.memory_space<vmem>>, vector<64x512xf32>
    %c0_2 = arith.constant 0 : index
    %c0_3 = arith.constant 0 : index
    %4 = vector.load %arg3[%c0_2, %c0_3] : memref<64x512xf32, #tpu.memory_space<vmem>>, vector<64x512xf32>
    %5 = arith.subf %3, %4 : vector<64x512xf32>
    %c0_4 = arith.constant 0 : index
    %c0_5 = arith.constant 0 : index
    %6 = vector.load %arg6[%c0_4, %c0_5] : memref<64x1xf32, #tpu.memory_space<vmem>>, vector<64x1xf32>
    %cst = arith.constant dense<0.000000e+00> : vector<64xf32>
    %7 = vector.multi_reduction <add>, %5, %cst [1] : vector<64x512xf32> to vector<64xf32>
    %8 = vector.shape_cast %7 : vector<64xf32> to vector<64x1xf32>
    %9 = arith.addf %6, %8 : vector<64x1xf32>
    %c0_6 = arith.constant 0 : index
    %c0_7 = arith.constant 0 : index
    %10 = vector.load %arg6[%c0_6, %c0_7] : memref<64x1xf32, #tpu.memory_space<vmem>>, vector<64x1xf32>
    tpu.vector_store %arg6[%c0_6, %c0_7], %9 {strides = array<i32>} : memref<64x1xf32, #tpu.memory_space<vmem>>, vector<64x1xf32>,
    %c0_i32_8 = arith.constant 0 : i32
    %11 = arith.cmpi eq, %arg1, %c0_i32_8 : i32
    %12 = arith.extui %11 : i1 to i32
    %c0_i32_9 = arith.constant 0 : i32
    %13 = arith.cmpi ne, %12, %c0_i32_9 : i32
    scf.if %13 {
      %c0_10 = arith.constant 0 : index
      %c0_11 = arith.constant 0 : index
      %14 = vector.load %arg6[%c0_10, %c0_11] : memref<64x1xf32, #tpu.memory_space<vmem>>, vector<64x1xf32>
      %15 = arith.mulf %14, %14 : vector<64x1xf32>
      %c0_12 = arith.constant 0 : index
      %c0_13 = arith.constant 0 : index
      %16 = vector.load %arg4[%c0_12, %c0_13] : memref<64x1xf32, #tpu.memory_space<vmem>>, vector<64x1xf32>
      %17 = arith.mulf %15, %16 : vector<64x1xf32>
      %18 = vector.shape_cast %17 : vector<64x1xf32> to vector<1x64x1xf32>
      %cst_14 = arith.constant dense<0.000000e+00> : vector<1xf32>
      %19 = vector.multi_reduction <add>, %18, %cst_14 [1, 2] : vector<1x64x1xf32> to vector<1xf32>
      %20 = vector.shape_cast %19 : vector<1xf32> to vector<1x1x1xf32>
      %21 = vector.extract %20[0, 0, 0] : f32 from vector<1x1x1xf32>
      %22 = vector.broadcast %21 : f32 to vector<8x128xf32>
      %c0_15 = arith.constant 0 : index
      %c0_16 = arith.constant 0 : index
      %23 = vector.load %arg5[%c0_15, %c0_16] : memref<8x128xf32, #tpu.memory_space<vmem>>, vector<8x128xf32>
      tpu.vector_store %arg5[%c0_15, %c0_16], %22 {strides = array<i32>} : memref<8x128xf32, #tpu.memory_space<vmem>>, vector<8x128xf32>,
    } else {
    }
    return
  }
  func.func @transform_0(%arg0: i32, %arg1: i32) -> (i32, i32) {
    %c0_i32 = arith.constant 0 : i32
    return %arg0, %arg1 : i32, i32
  }
  func.func @transform_1(%arg0: i32, %arg1: i32) -> (i32, i32) {
    %c0_i32 = arith.constant 0 : i32
    return %arg0, %arg1 : i32, i32
  }
  func.func @transform_2(%arg0: i32, %arg1: i32) -> (i32, i32) {
    %c0_i32 = arith.constant 0 : i32
    %c0_i32_0 = arith.constant 0 : i32
    return %arg0, %c0_i32 : i32, i32
  }
  func.func @transform_3(%arg0: i32, %arg1: i32) -> (i32, i32) {
    %c0_i32 = arith.constant 0 : i32
    %c0_i32_0 = arith.constant 0 : i32
    return %arg0, %c0_i32 : i32, i32
  }
}

</mosaic_0001>

<bundles_post_ra>
// kernel: tpu_custom_call.1
= control target key start
LH: loop header
LB: loop body
LE: loop exit
PB: predicated region body
PF: predicated region fallthrough
CT: control target
= control target key end

     0   :  { %8 = vsyncpa [#allocation4], 0  ;;  %s1256_s0 = inlined_call_operand.hbm [shape: f32[256,512], index: 0, kind: input, shape index: {}]   ;;  %s1257_s1 = inlined_call_operand.hbm [shape: f32[256,512], index: 1, kind: input, shape index: {}]   ;;  %s1258_s2 = inlined_call_operand.vmem [shape: f32[256,1], index: 2, kind: input, shape index: {}]   ;;  %s1259_s3 = inlined_call_operand.hbm [shape: f32[32,128], index: 3, kind: output, shape index: {}]  }
   0x1   :  { %10 = vsyncpa [#allocation4 + $0x1], 0 }
   0x2   :  { %11 = vsyncpa [#allocation7], 0 }
   0x3   :  { %13 = vsyncpa [#allocation7 + $0x1], 0 }
   0x4   :  { %14 = vsyncpa [#allocation5], 0 }
   0x5   :  { %16 = vsyncpa [#allocation5 + $0x1], 0  ;;  %s917_s12 = smov 0   ;;  %s919_s13 = smov 0  }
   0x6   :  { %s921_s14 = smov 0   ;;  %s923_s15 = smov 0  }
   0x7   :  { %s925_s16 = smov 0   ;;  %s927_s17 = smov 0  }
   0x8 LB: > { %s645_s18 = sadd.s32 4294967295, %s889_s17   ;;  %s646_s19 = sadd.s32 4294967294, %s889_s17   ;;  %s889_s17 = sphi %s927_s17, %s22_s17   ;;  %s885_s16 = sphi %s925_s16, %s1276_s16   ;;  %s881_s15 = sphi %s923_s15, %s1275_s15   ;;  %s877_s14 = sphi %s921_s14, %s1274_s14   ;;  %s873_s13 = sphi %s919_s13, %s1273_s13   ;;  %s869_s12 = sphi %s917_s12, %s1272_s12  }
   0x9   : > { %s34_s20 = sadd.s32 1, %s885_s16  ;;  %s43_s21 = sadd.s32 1, %s877_s14 }
   0xa   : > { %p36_p0 = scmp.ge.s32.totalorder %s34_s20, 4  ;;  %p50_p1 = scmp.ne.s32.totalorder %s877_s14, %s873_s13 }
   0xb   : > { %p51_p2 = scmp.eq.s32.totalorder %s889_s17, 0  ;;  %p56_p3 = scmp.ne.s32.totalorder %s873_s13, %s869_s12 }
   0xc   : > { %s1278_s20 = smov (%p36_p0, %s34_s20), 0  ;;  %p57_p5 = scmp.eq.s32.totalorder %s645_s18, 0 }
   0xd   : > { %p958_p4 = por %p51_p2, %p50_p1  ;;  %s38_s23 = ssub.s32 %s885_s16, %s1278_s20 }
   0xe   : > { %p134_p6 = scmp.eq.s32.totalorder %s645_s18, 3  ;;  %p41_p7 = scmp.eq.s32.totalorder %s38_s23, 0 }
   0xf   : > { %p964_p8 = por %p57_p5, %p56_p3  ;;  %p140_p10 = scmp.eq.s32.totalorder %s646_s19, 3 }
  0x10   : > { %p968_p9 = por %p134_p6, %p50_p1  ;;  %p690_p12 = scmp.lt.s32.totalorder %s889_s17, 4 }
  0x11   : > { %s1263_s24 = scalar_select %p964_p8, 1, 0 }
  0x12   : > { %s1264_s25 = scalar_select %p968_p9, 1, 0 }
  0x13   : > { %s973_s26 = scalar_select %p41_p7, %s877_s14, %s43_s21  }
  0x14   : > { %p975_p11 = por %p140_p10, %p56_p3  ;;  %s981_s28 = sand.u32 1, %s877_s14  }
  0x15   : > { %s649_s29 = sshll.u32 %s981_s28, 8  ;;  %s668_s30 = sshll.u32 %s885_s16, 12 }
  0x16   : > { %s1265_s27 = scalar_select %p975_p11, 1, 0 }
  0x17   : > { %s990_s6 = scalar_lea.hbm %s1256_s0, %s668_s30  ;;  %s164_s7 = scalar_lea.vmem [#allocation3], %s649_s29 }
  0x18   : > { %s174_s8 = sshll.u32 %s164_s7, 4  ;;  %p998_p13 = pnand %p690_p12, %p958_p4  ;;  %s994_s8 = int_to_ptr.vmem [resolvable:$true] %s174_s8 }
  0x19   : > { %s161_s10 = scalar_lea.sflag [#allocation4], %s981_s28  ;;  %s743_s11 = scalar_lea.hbm %s990_s6, 4096 }
  0x1a   : > { %p744_p1 = scmp.ne.s32.totalorder %s990_s6, %s743_s11  ;;  %p745_p2 = pneg %p998_p13 }
  0x1b   : > { %s748_s21 = scalar_lea.hbm %s1256_s0, 16384  ;;  %p749_p4 = scmp.lt.u32.totalorder %s990_s6, %s1256_s0 }
  0x1c   : > { %p746_p3 = pnand %p745_p2, %p744_p1  ;;  %p750_p6 = scmp.lt.u32.totalorder %s748_s21, %s743_s11 }
  0x1d   : > { %p752_p10 = scmp.lt.u32.totalorder %s743_s11, %s990_s6 }
  0x1e   : > { %p747_p5 = pneg %p746_p3  ;;  %p751_p7 = por %p750_p6, %p749_p4 }
  0x20   : > { %p753_p12 = por %p752_p10, %p751_p7 }
  0x22   : > { %p754_p0 = pnand %p753_p12, %p747_p5 }
  0x24   : > { %757 = shalt.err (!%p754_p0)
}
  0x25   : > { %s758_s4 = scalar_lea.vmem %s994_s8, 4096  ;;  %s891_s5 = smov [#allocation3]  }
  0x26   : > { %p759_p1 = scmp.ne.s32.totalorder %s994_s8, %s758_s4  ;;  %s763_s7 = sshll.u32 %s891_s5, 4  ;;  %s764_s7 = int_to_ptr.vmem [resolvable:$false] %s763_s7 }
  0x27   : > { %s765_s18 = scalar_lea.vmem %s764_s7, 8192  ;;  %p766_p9 = scmp.lt.s32.totalorder %s994_s8, %s764_s7 }
  0x28   : > { %p761_p3 = pnand %p759_p1, %p745_p2  ;;  %p767_p4 = scmp.lt.s32.totalorder %s765_s18, %s758_s4 }
  0x2a   : > { %p762_p11 = pneg %p761_p3  ;;  %p768_p6 = por %p767_p4, %p766_p9 }
  0x2c   : > { %p769_p7 = pnand %p768_p6, %p762_p11 }
  0x2e   : > { %772 = shalt.err (!%p769_p7)
}
  0x2f   : > { %s892_s11 = smov 512   ;;  %s893_s19 = smov 32  }
  0x30   : > { %682 = dma.hbm_to_vmem [thread:$0]  (!%p998_p13), %s990_s6, 4096, %s994_s8, %s161_s10, %s892_s11, %s892_s11, %s893_s19  }
  0x31   : > { %p215_p9 = scmp.lt.s32.totalorder %s889_s17, 5  ;;  %s1040_s23 = scalar_lea.hbm %s1257_s1, %s668_s30 }
  0x32   : > { %p1267_p11 = scmp.ge.s32.totalorder %s889_s17, 1  ;;  %s188_s5 = scalar_lea.vmem [#allocation6], %s649_s29 }
  0x33   : > { %s198_s7 = sshll.u32 %s188_s5, 4  ;;  %s185_s6 = scalar_lea.sflag [#allocation7], %s981_s28  ;;  %s1050_s7 = int_to_ptr.vmem [resolvable:$true] %s198_s7 }
  0x34   : > { %p1044_p0 = pnand %p1267_p11, %p215_p9  ;;  %s773_s8 = scalar_lea.hbm %s1040_s23, 4096 }
  0x35   : > { %p774_p5 = scmp.ne.s32.totalorder %s1040_s23, %s773_s8  ;;  %s778_s18 = scalar_lea.hbm %s1257_s1, 16384 }
  0x36   : > { %p779_p1 = scmp.lt.u32.totalorder %s1040_s23, %s1257_s1  ;;  %p780_p3 = scmp.lt.u32.totalorder %s778_s18, %s773_s8 }
  0x37   : > { %p776_p10 = pnand %p774_p5, %p745_p2  ;;  %p782_p6 = scmp.lt.u32.totalorder %s773_s8, %s1040_s23 }
  0x38   : > { %p781_p4 = por %p780_p3, %p779_p1 }
  0x39   : > { %p777_p12 = pneg %p776_p10 }
  0x3a   : > { %p783_p7 = por %p782_p6, %p781_p4 }
  0x3c   : > { %p784_p9 = pnand %p783_p7, %p777_p12 }
  0x3e   : > { %787 = shalt.err (!%p784_p9)
}
  0x3f   : > { %s788_s29 = scalar_lea.vmem %s1050_s7, 4096  ;;  %s894_s5 = smov [#allocation6]  }
  0x40   : > { %p789_p11 = scmp.ne.s32.totalorder %s1050_s7, %s788_s29  ;;  %s793_s30 = sshll.u32 %s894_s5, 4  ;;  %s794_s30 = int_to_ptr.vmem [resolvable:$false] %s793_s30 }
  0x41   : > { %s795_s10 = scalar_lea.vmem %s794_s30, 8192  ;;  %p796_p8 = scmp.lt.s32.totalorder %s1050_s7, %s794_s30 }
  0x42   : > { %p791_p5 = pnand %p789_p11, %p745_p2  ;;  %p797_p1 = scmp.lt.s32.totalorder %s795_s10, %s788_s29 }
  0x44   : > { %p792_p10 = pneg %p791_p5  ;;  %p798_p3 = por %p797_p1, %p796_p8 }
  0x46   : > { %p799_p4 = pnand %p798_p3, %p792_p10 }
  0x48   : > { %802 = shalt.err (!%p799_p4)
}
  0x49   : > { %685 = dma.hbm_to_vmem [thread:$0]  (!%p998_p13), %s1040_s23, 4096, %s1050_s7, %s185_s6, %s892_s11, %s892_s11, %s893_s19  }
  0x4a   : > { %219 = sbr.rel (%p1044_p0) target bundleno = 493 (0x1ed), region = 32  ;;  %s1084_s8 = sand.u32 (!%p1044_p0), 1, %s873_s13  }
  0x4b   : > { %s658_s18 = sshll.u32 (!%p1044_p0), %s1084_s8, 8  ;;  %s222_s21 = scalar_lea.sflag (!%p1044_p0), [#allocation4], %s1084_s8 }
  0x4c   : > { %s1088_s9 = scalar_lea.vmem (!%p1044_p0), [#allocation3], %s658_s18  ;;  %p1269_p8 = scmp.ne.s32.totalorder (!%p1044_p0), %s1263_s24, 0 }
  0x51   : > { %856 = dma.done.wait (%p1269_p8), %s222_s21, 4096  }
  0x52   : > { %858 = vsyncadd (%p1269_p8), %s222_s21, 4294963200  ;;  %s231_s28 = scalar_lea.sflag [#allocation7], %s1084_s8  ;;  %s1095_s11 = scalar_lea.vmem [#allocation6], %s658_s18 }
  0x53   : > { %860 = dma.done.wait (%p1269_p8), %s231_s28, 4096  }
  0x54   : > { %862 = vsyncadd (%p1269_p8), %s231_s28, 4294963200  ;;  %vm281_vm0 = vcmask 7168   ;;  %v895_v0 = vmov 0.0   ;;  %v290_v1 = vld [vmem:[%s1088_s9] sm:$0xff]  ;;  %v291_v2 = vld [vmem:[%s1088_s9 + $0x8] sm:$0xff]  ;;  %s661_s24 = sshll.u32 %s881_s15, 3 }
  0x55   : > { %282 = vst.msk [vmem:[#allocation2] sm:$0xff] %vm281_vm0, %v895_v0  ;;  %283 = vst.msk [vmem:[#allocation2 + $0x8] sm:$0xff] %vm281_vm0, %v895_v0  ;;  %v292_v3 = vld [vmem:[%s1088_s9 + $0x10] sm:$0xff]  ;;  %v293_v4 = vld [vmem:[%s1088_s9 + $0x18] sm:$0xff]  ;;  %p272_p13 = scmp.lt.s32.totalorder %s661_s24, 31  ;;  %s660_s6 = sshll.u32 %s1084_s8, 3 }
  0x56   : > { %284 = vst.msk [vmem:[#allocation2 + $0x10] sm:$0xff] %vm281_vm0, %v895_v0  ;;  %285 = vst.msk [vmem:[#allocation2 + $0x18] sm:$0xff] %vm281_vm0, %v895_v0  ;;  %v322_v5 = vld [vmem:[%s1095_s11] sm:$0xff]  ;;  %v323_v6 = vld [vmem:[%s1095_s11 + $0x8] sm:$0xff]  ;;  %s266_s22 = scalar_lea.vmem [#allocation8], %s660_s6  ;;  %s664_s5 = sshll.u32 %s881_s15, 7 }
  0x57   : > { %286 = vst.msk [vmem:[#allocation2 + $0x20] sm:$0xff] %vm281_vm0, %v895_v0  ;;  %287 = vst.msk [vmem:[#allocation2 + $0x28] sm:$0xff] %vm281_vm0, %v895_v0  ;;  %v324_v7 = vld [vmem:[%s1095_s11 + $0x10] sm:$0xff]  ;;  %v325_v8 = vld [vmem:[%s1095_s11 + $0x18] sm:$0xff]  ;;  %v354_v9 = vsub.f32 %v290_v1, %v322_v5  ;;  %v355_v10 = vsub.f32 %v291_v2, %v323_v6  ;;  %s1280_s24 = smov (!%p272_p13, %s661_s24), 31  ;;  %s526_s29 = sshll.u32 %s266_s22, 4  ;;  %s1205_s29 = int_to_ptr.vmem [resolvable:$true] %s526_s29 }
  0x58   : > { %288 = vst.msk [vmem:[#allocation2 + $0x30] sm:$0xff] %vm281_vm0, %v895_v0  ;;  %289 = vst.msk [vmem:[#allocation2 + $0x38] sm:$0xff] %vm281_vm0, %v895_v0  ;;  %v298_v11 = vld [vmem:[%s1088_s9 + $0x40] sm:$0xff]  ;;  %v356_v12 = vsub.f32 %v292_v3, %v324_v7  ;;  %v299_v13 = vld [vmem:[%s1088_s9 + $0x48] sm:$0xff]  ;;  %v357_v16 = vsub.f32 %v293_v4, %v325_v8  ;;  %s662_s19 = sshll.u32 %s1280_s24, 3  ;;  %s1210_s21 = scalar_lea.hbm %s1259_s3, %s664_s5 }
  0x59   : > { %v300_v14 = vld [vmem:[%s1088_s9 + $0x50] sm:$0xff]  ;;  %v301_v15 = vld [vmem:[%s1088_s9 + $0x58] sm:$0xff]  ;;  %v394_v17 = vadd.f32 %v355_v10, %v354_v9  ;;  %v330_v18 = vld [vmem:[%s1095_s11 + $0x40] sm:$0xff]  ;;  %s1181_s7 = scalar_lea.vmem %s1258_s2, %s662_s19  ;;  %s803_s28 = scalar_lea.vmem %s1205_s29, 128 }
  0x5a   : > { %v331_v19 = vld [vmem:[%s1095_s11 + $0x48] sm:$0xff]  ;;  %v332_v20 = vld [vmem:[%s1095_s11 + $0x50] sm:$0xff]  ;;  %v333_v21 = vld [vmem:[%s1095_s11 + $0x58] sm:$0xff]  ;;  %v362_v22 = vsub.f32 %v298_v11, %v330_v18  ;;  %p804_p2 = scmp.ne.s32.totalorder %s1205_s29, %s803_s28  ;;  %p1270_p0 = scmp.ne.s32.totalorder %s1264_s25, 0 }
  0x5b   : > { %v363_v23 = vsub.f32 %v299_v13, %v331_v19  ;;  %v364_v24 = vsub.f32 %v300_v14, %v332_v20  ;;  %v294_v25 = vld [vmem:[%s1088_s9 + $0x20] sm:$0xff]  ;;  %v295_v26 = vld [vmem:[%s1088_s9 + $0x28] sm:$0xff]  ;;  %v395_v27 = vadd.f32 %v394_v17, %v356_v12  ;;  %v296_v28 = vld [vmem:[%s1088_s9 + $0x30] sm:$0xff]  ;;  %v365_v31 = vsub.f32 %v301_v15, %v333_v21  ;;  %s896_s15 = smov [#allocation8]  }
  0x5c   : > { %v297_v29 = vld [vmem:[%s1088_s9 + $0x38] sm:$0xff]  ;;  %v326_v30 = vld [vmem:[%s1095_s11 + $0x20] sm:$0xff]  ;;  %v327_v33 = vld [vmem:[%s1095_s11 + $0x28] sm:$0xff]  ;;  %p805_p12 = pnand %p804_p2, %p1270_p0 }
  0x5d   : > { %v404_v32 = vadd.f32 %v363_v23, %v362_v22  ;;  %v328_v34 = vld [vmem:[%s1095_s11 + $0x30] sm:$0xff]  ;;  %v329_v35 = vld [vmem:[%s1095_s11 + $0x38] sm:$0xff]  ;;  %v358_v36 = vsub.f32 %v294_v25, %v326_v30  ;;  %v396_v37 = vadd.f32 %v395_v27, %v357_v16  ;;  %v359_v38 = vsub.f32 %v295_v26, %v327_v33  ;;  %v302_v40 = vld [vmem:[%s1088_s9 + $0x60] sm:$0xff] }
  0x5e   : > { %v360_v39 = vsub.f32 %v296_v28, %v328_v34  ;;  %v303_v41 = vld [vmem:[%s1088_s9 + $0x68] sm:$0xff]  ;;  %v304_v42 = vld [vmem:[%s1088_s9 + $0x70] sm:$0xff]  ;;  %v305_v44 = vld [vmem:[%s1088_s9 + $0x78] sm:$0xff]  ;;  %v361_v47 = vsub.f32 %v297_v29, %v329_v35  ;;  %p806_p6 = pneg %p805_p12 }
  0x5f   : > { %v405_v43 = vadd.f32 %v404_v32, %v364_v24  ;;  %v334_v45 = vld [vmem:[%s1095_s11 + $0x60] sm:$0xff]  ;;  %v335_v46 = vld [vmem:[%s1095_s11 + $0x68] sm:$0xff]  ;;  %397 = vadd.xlane.f32.xlu0 %v396_v37  ;;  %v399_v48 = vadd.f32 %v359_v38, %v358_v36  ;;  %v336_v49 = vld [vmem:[%s1095_s11 + $0x70] sm:$0xff] }
  0x60   : > { %v337_v50 = vld [vmem:[%s1095_s11 + $0x78] sm:$0xff]  ;;  %v366_v51 = vsub.f32 %v302_v40, %v334_v45  ;;  %v367_v52 = vsub.f32 %v303_v41, %v335_v46  ;;  %v306_v53 = vld [vmem:[%s1088_s9 + $0x80] sm:$0xff]  ;;  %v368_v55 = vsub.f32 %v304_v42, %v336_v49  ;;  %v307_v56 = vld [vmem:[%s1088_s9 + $0x88] sm:$0xff] }
  0x61   : > { %v406_v54 = vadd.f32 %v405_v43, %v365_v31  ;;  %v308_v57 = vld [vmem:[%s1088_s9 + $0x90] sm:$0xff]  ;;  %v309_v58 = vld [vmem:[%s1088_s9 + $0x98] sm:$0xff]  ;;  %v400_v59 = vadd.f32 %v399_v48, %v360_v39  ;;  %v369_v60 = vsub.f32 %v305_v44, %v337_v50  ;;  %v338_v62 = vld [vmem:[%s1095_s11 + $0x80] sm:$0xff] }
  0x62   : > { %v409_v61 = vadd.f32 %v367_v52, %v366_v51  ;;  %v339_v63 = vld [vmem:[%s1095_s11 + $0x88] sm:$0xff]  ;;  %v340_v0 = vld [vmem:[%s1095_s11 + $0x90] sm:$0xff]  ;;  %v341_v1 = vld [vmem:[%s1095_s11 + $0x98] sm:$0xff]  ;;  %v370_v2 = vsub.f32 %v306_v53, %v338_v62 }
  0x63   : > { %407 = vadd.xlane.f32.xlu1 %v406_v54  ;;  %v371_v3 = vsub.f32 %v307_v56, %v339_v63  ;;  %v372_v4 = vsub.f32 %v308_v57, %v340_v0  ;;  %v310_v5 = vld [vmem:[%s1088_s9 + $0xa0] sm:$0xff]  ;;  %v311_v6 = vld [vmem:[%s1088_s9 + $0xa8] sm:$0xff]  ;;  %v401_v7 = vadd.f32 %v400_v59, %v361_v47  ;;  %v312_v9 = vld [vmem:[%s1088_s9 + $0xb0] sm:$0xff]  ;;  %v373_v12 = vsub.f32 %v309_v58, %v341_v1 }
  0x64   : > { %v410_v8 = vadd.f32 %v409_v61, %v368_v55  ;;  %v313_v10 = vld [vmem:[%s1088_s9 + $0xb8] sm:$0xff]  ;;  %v342_v11 = vld [vmem:[%s1095_s11 + $0xa0] sm:$0xff]  ;;  %v343_v14 = vld [vmem:[%s1095_s11 + $0xa8] sm:$0xff] }
  0x65   : > { %v414_v13 = vadd.f32 %v371_v3, %v370_v2  ;;  %v344_v15 = vld [vmem:[%s1095_s11 + $0xb0] sm:$0xff]  ;;  %v345_v16 = vld [vmem:[%s1095_s11 + $0xb8] sm:$0xff]  ;;  %v374_v17 = vsub.f32 %v310_v5, %v342_v11  ;;  %402 = vadd.xlane.f32.xlu0 %v401_v7  ;;  %v375_v19 = vsub.f32 %v311_v6, %v343_v14  ;;  %v314_v21 = vld [vmem:[%s1088_s9 + $0xc0] sm:$0xff] }
  0x66   : > { %v411_v18 = vadd.f32 %v410_v8, %v369_v60  ;;  %v376_v20 = vsub.f32 %v312_v9, %v344_v15  ;;  %v315_v22 = vld [vmem:[%s1088_s9 + $0xc8] sm:$0xff]  ;;  %v316_v23 = vld [vmem:[%s1088_s9 + $0xd0] sm:$0xff]  ;;  %v317_v25 = vld [vmem:[%s1088_s9 + $0xd8] sm:$0xff]  ;;  %v377_v28 = vsub.f32 %v313_v10, %v345_v16 }
  0x67   : > { %v415_v24 = vadd.f32 %v414_v13, %v372_v4  ;;  %v346_v26 = vld [vmem:[%s1095_s11 + $0xc0] sm:$0xff]  ;;  %v347_v27 = vld [vmem:[%s1095_s11 + $0xc8] sm:$0xff]  ;;  %v419_v29 = vadd.f32 %v375_v19, %v374_v17  ;;  %v348_v30 = vld [vmem:[%s1095_s11 + $0xd0] sm:$0xff] }
  0x68   : > { %412 = vadd.xlane.f32.xlu1 %v411_v18  ;;  %v349_v31 = vld [vmem:[%s1095_s11 + $0xd8] sm:$0xff]  ;;  %v378_v32 = vsub.f32 %v314_v21, %v346_v26  ;;  %v379_v33 = vsub.f32 %v315_v22, %v347_v27  ;;  %v318_v34 = vld [vmem:[%s1088_s9 + $0xe0] sm:$0xff]  ;;  %v380_v36 = vsub.f32 %v316_v23, %v348_v30  ;;  %v319_v37 = vld [vmem:[%s1088_s9 + $0xe8] sm:$0xff] }
  0x69   : > { %v416_v35 = vadd.f32 %v415_v24, %v373_v12  ;;  %v320_v38 = vld [vmem:[%s1088_s9 + $0xf0] sm:$0xff]  ;;  %v321_v39 = vld [vmem:[%s1088_s9 + $0xf8] sm:$0xff]  ;;  %v420_v40 = vadd.f32 %v419_v29, %v376_v20  ;;  %v381_v41 = vsub.f32 %v317_v25, %v349_v31  ;;  %v350_v43 = vld [vmem:[%s1095_s11 + $0xe0] sm:$0xff]  ;;  %s513_s9 = scalar_lea.sflag [#allocation5], %s1084_s8 }
  0x6a   : > { %v424_v42 = vadd.f32 %v379_v33, %v378_v32  ;;  %v351_v44 = vld [vmem:[%s1095_s11 + $0xe8] sm:$0xff]  ;;  %v352_v45 = vld [vmem:[%s1095_s11 + $0xf0] sm:$0xff]  ;;  %v353_v46 = vld [vmem:[%s1095_s11 + $0xf8] sm:$0xff]  ;;  %v382_v47 = vsub.f32 %v318_v34, %v350_v43  ;;  %s807_s11 = sshll.u32 %s896_s15, 4  ;;  %s808_s11 = int_to_ptr.vmem [resolvable:$false] %s807_s11 }
  0x6b   : > { %417 = vadd.xlane.f32.xlu0 %v416_v35  ;;  %v383_v48 = vsub.f32 %v319_v37, %v351_v44  ;;  %v384_v49 = vsub.f32 %v320_v38, %v352_v45  ;;  %v421_v50 = vadd.f32 %v420_v40, %v377_v28  ;;  %v385_v52 = vsub.f32 %v321_v39, %v353_v46  ;;  %v386_v57 = vld [vmem:[#allocation2] sm:$0xff]  ;;  %v388_v60 = vld [vmem:[#allocation2 + $0x10] sm:$0xff]  ;;  %v387_v63 = vld [vmem:[#allocation2 + $0x8] sm:$0xff]  ;;  %s809_s24 = scalar_lea.vmem %s808_s11, 256  ;;  %p810_p7 = scmp.lt.s32.totalorder %s1205_s29, %s808_s11 }
  0x6c   : > { %v425_v51 = vadd.f32 %v424_v42, %v380_v36  ;;  %v389_v1 = vld [vmem:[#allocation2 + $0x18] sm:$0xff]  ;;  %v390_v5 = vld [vmem:[#allocation2 + $0x20] sm:$0xff]  ;;  %v391_v9 = vld [vmem:[#allocation2 + $0x28] sm:$0xff]  ;;  %p811_p9 = scmp.lt.s32.totalorder %s809_s24, %s803_s28 }
  0x6d   : > { %v429_v53 = vadd.f32 %v383_v48, %v382_v47  ;;  %422 = vadd.xlane.f32.xlu1 %v421_v50  ;;  %v392_v13 = vld [vmem:[#allocation2 + $0x30] sm:$0xff]  ;;  %v470_v14 = vld [vmem:[%s1181_s7] sm:$0xff]  ;;  %v471_v19 = vld [vmem:[%s1181_s7 + $0x8] sm:$0xff] }
  0x6e   : > { %v426_v54 = vadd.f32 %v425_v51, %v381_v41  ;;  %v472_v20 = vld [vmem:[%s1181_s7 + $0x10] sm:$0xff]  ;;  %v393_v22 = vld [vmem:[#allocation2 + $0x38] sm:$0xff]  ;;  %v474_v33 = vld [vmem:[%s1181_s7 + $0x20] sm:$0xff]  ;;  %p812_p11 = por %p811_p9, %p810_p7 }
  0x6f   : > { %v430_v55 = vadd.f32 %v429_v53, %v384_v49  ;;  %v473_v26 = vld [vmem:[%s1181_s7 + $0x18] sm:$0xff]  ;;  %v475_v42 = vld [vmem:[%s1181_s7 + $0x28] sm:$0xff]  ;;  %v476_v47 = vld [vmem:[%s1181_s7 + $0x30] sm:$0xff] }
  0x70   : > { %427 = vadd.xlane.f32.xlu0 %v426_v54  ;;  %v477_v54 = vld [vmem:[%s1181_s7 + $0x38] sm:$0xff]  ;;  %p813_p5 = pnand %p812_p11, %p806_p6 }
  0x71   : > { %v431_v56 = vadd.f32 %v430_v55, %v385_v52 }
  0x73   : > { %432 = vadd.xlane.f32.xlu1 %v431_v56 }
  0xec   : > { %v398_v58 = vpop.xlane.xlu0 %397 }
  0xed   : > { %v434_v59 = vadd.f32 %v398_v58, %v386_v57 }
  0xef   : > { %443 = vst.msk [vmem:[#allocation2] sm:$0xff] %vm281_vm0, %v434_v59 }
  0xf0   : > { %v408_v61 = vpop.xlane.xlu1 %407 }
  0xf1   : > { %v436_v62 = vadd.f32 %v408_v61, %v388_v60 }
  0xf2   : > { %v403_v0 = vpop.xlane.xlu0 %402 }
  0xf3   : > { %445 = vst.msk [vmem:[#allocation2 + $0x10] sm:$0xff] %vm281_vm0, %v436_v62  ;;  %v435_v2 = vadd.f32 %v403_v0, %v387_v63 }
  0xf5   : > { %v413_v3 = vpop.xlane.xlu1 %412  ;;  %444 = vst.msk [vmem:[#allocation2 + $0x8] sm:$0xff] %vm281_vm0, %v435_v2 }
  0xf6   : > { %v437_v4 = vadd.f32 %v413_v3, %v389_v1  ;;  %v454_v6 = vld [vmem:[#allocation2] sm:$0xff] }
  0xf7   : > { %v462_v11 = vmul.f32 %v454_v6, %v454_v6 }
  0xf8   : > { %446 = vst.msk [vmem:[#allocation2 + $0x18] sm:$0xff] %vm281_vm0, %v437_v4  ;;  %v418_v7 = vpop.xlane.xlu0 %417 }
  0xf9   : > { %v438_v8 = vadd.f32 %v418_v7, %v390_v5  ;;  %v478_v24 = vmul.f32 %v470_v14, %v462_v11 }
  0xfa   : > { %v456_v10 = vld [vmem:[#allocation2 + $0x10] sm:$0xff]  ;;  %v423_v12 = vpop.xlane.xlu1 %422 }
  0xfb   : > { %447 = vst.msk [vmem:[#allocation2 + $0x20] sm:$0xff] %vm281_vm0, %v438_v8  ;;  %v439_v15 = vadd.f32 %v423_v12, %v391_v9  ;;  %v464_v16 = vmul.f32 %v456_v10, %v456_v10  ;;  %v486_v35 = vsel %vm281_vm0, %v478_v24, 0.0 }
  0xfc   : > { %v455_v18 = vld [vmem:[#allocation2 + $0x8] sm:$0xff] }
  0xfd   : > { %v428_v17 = vpop.xlane.xlu0 %427  ;;  %448 = vst.msk [vmem:[#allocation2 + $0x28] sm:$0xff] %vm281_vm0, %v439_v15  ;;  %v463_v23 = vmul.f32 %v455_v18, %v455_v18  ;;  %v480_v30 = vmul.f32 %v472_v20, %v464_v16 }
  0xfe   : > { %v440_v21 = vadd.f32 %v428_v17, %v392_v13 }
  0xff   : > { %v457_v25 = vld [vmem:[#allocation2 + $0x18] sm:$0xff]  ;;  %v479_v29 = vmul.f32 %v471_v19, %v463_v23  ;;  %v489_v39 = vsel %vm281_vm0, %v480_v30, 0.0 }
 0x100   : > { %449 = vst.msk [vmem:[#allocation2 + $0x30] sm:$0xff] %vm281_vm0, %v440_v21  ;;  %v433_v27 = vpop.xlane.xlu1 %432  ;;  %v465_v28 = vmul.f32 %v457_v25, %v457_v25 }
 0x101   : > { %v441_v31 = vadd.f32 %v433_v27, %v393_v22  ;;  %v487_v36 = vsel %vm281_vm0, %v479_v29, 0.0 }
 0x102   : > { %v458_v32 = vld [vmem:[#allocation2 + $0x20] sm:$0xff]  ;;  %v481_v34 = vmul.f32 %v473_v26, %v465_v28  ;;  %v488_v38 = vadd.f32 %v487_v36, %v486_v35 }
 0x103   : > { %450 = vst.msk [vmem:[#allocation2 + $0x38] sm:$0xff] %vm281_vm0, %v441_v31  ;;  %v466_v37 = vmul.f32 %v458_v32, %v458_v32 }
 0x104   : > { %v491_v40 = vsel %vm281_vm0, %v481_v34, 0.0  ;;  %v459_v41 = vld [vmem:[#allocation2 + $0x28] sm:$0xff]  ;;  %v490_v44 = vadd.f32 %v489_v39, %v488_v38 }
 0x105   : > { %v482_v43 = vmul.f32 %v474_v33, %v466_v37  ;;  %v467_v45 = vmul.f32 %v459_v41, %v459_v41 }
 0x106   : > { %v492_v48 = vadd.f32 %v491_v40, %v490_v44 }
 0x107   : > { %v460_v46 = vld [vmem:[#allocation2 + $0x30] sm:$0xff]  ;;  %v493_v49 = vsel %vm281_vm0, %v482_v43, 0.0  ;;  %v483_v51 = vmul.f32 %v475_v42, %v467_v45 }
 0x108   : > { %v468_v50 = vmul.f32 %v460_v46, %v460_v46  ;;  %v494_v52 = vadd.f32 %v493_v49, %v492_v48 }
 0x109   : > { %v495_v56 = vsel %vm281_vm0, %v483_v51, 0.0 }
 0x10a   : > { %v461_v53 = vld [vmem:[#allocation2 + $0x38] sm:$0xff]  ;;  %v484_v55 = vmul.f32 %v476_v47, %v468_v50  ;;  %v496_v58 = vadd.f32 %v495_v56, %v494_v52 }
 0x10b   : > { %v469_v57 = vmul.f32 %v461_v53, %v461_v53 }
 0x10c   : > { %v497_v59 = vsel %vm281_vm0, %v484_v55, 0.0 }
 0x10d   : > { %v485_v60 = vmul.f32 %v477_v54, %v469_v57  ;;  %v498_v61 = vadd.f32 %v497_v59, %v496_v58 }
 0x10f   : > { %v499_v62 = vsel %vm281_vm0, %v485_v60, 0.0 }
 0x110   : > { %v500_v63 = vadd.f32 %v499_v62, %v498_v61 }
 0x112   : > { %501 = vadd.xlane.f32.xlu0 %v500_v63 }
 0x19f   : > { %v502_v0 = vpop.xlane.xlu0 %501 }
 0x1a0   : > { %v503_v1 = vrot.slane %v502_v0, 4 }
 0x1a2   : > { %v504_v2 = vadd.f32 %v503_v1, %v502_v0 }
 0x1a4   : > { %v505_v3 = vrot.slane %v504_v2, 2 }
 0x1a6   : > { %v506_v4 = vadd.f32 %v505_v3, %v504_v2 }
 0x1a8   : > { %v507_v5 = vrot.slane %v506_v4, 1 }
 0x1aa   : > { %v508_v6 = vadd.f32 %v507_v5, %v506_v4 }
 0x1ac   : > { %671 = vpush %v508_v6 }
 0x1dd   : > { %s672_s30 = spop %671 }
 0x1de   : > { %v510_v7 = vstv %s672_s30 }
 0x1df   : > { %511 = vst [vmem:[%s266_s22] sm:$0xff] %v510_v7 }
 0x1e0   : > { %816 = shalt.err (!%p813_p5)
}
 0x1e1   : > { %s817_s8 = scalar_lea.hbm %s1210_s21, 128  ;;  %s821_s4 = scalar_lea.hbm %s1259_s3, 512 }
 0x1e2   : > { %p818_p10 = scmp.ne.s32.totalorder %s1210_s21, %s817_s8  ;;  %p822_p4 = scmp.lt.u32.totalorder %s1210_s21, %s1259_s3 }
 0x1e3   : > { %p823_p8 = scmp.lt.u32.totalorder %s821_s4, %s817_s8  ;;  %p825_p2 = scmp.lt.u32.totalorder %s817_s8, %s1210_s21 }
 0x1e4   : > { %p819_p1 = pnand %p818_p10, %p1270_p0 }
 0x1e5   : > { %p824_p13 = por %p823_p8, %p822_p4 }
 0x1e6   : > { %p820_p3 = pneg %p819_p1 }
 0x1e7   : > { %p826_p12 = por %p825_p2, %p824_p13 }
 0x1e9   : > { %p827_p6 = pnand %p826_p12, %p820_p3 }
 0x1eb   : > { %830 = shalt.err (!%p827_p6)
}
 0x1ec   : > { %677 = dma.vmem_to_hbm [thread:$0]  (%p1270_p0), %s1205_s29, 128, %s1210_s21, %s513_s9  }
 0x1ed PF: > { %p691_p7 = scmp.ge.s32.totalorder %s889_s17, 2  ;;  %s538_s22 = sand.u32 1, %s869_s12  }
 0x1ee   : > { %p1271_p9 = scmp.ne.s32.totalorder %s1265_s27, 0  ;;  %s539_s5 = scalar_lea.sflag [#allocation5], %s538_s22 }
 0x1f0   : > { %p687_p11 = pnand %p691_p7, %p1271_p9 }
 0x1f2   : > { %864 = dma.done.wait (!%p687_p11), %s539_s5, 128  }
 0x1f3   : > { %866 = vsyncadd (!%p687_p11), %s539_s5, 4294967168  ;;  %s22_s17 = sadd.s32 1, %s889_s17   ;;  %s1272_s12 = smov %s873_s13 }
 0x1f4   : > { %p19_p5 = scmp.ge.s32.totalorder %s22_s17, 6   ;;  %s1273_s13 = smov %s877_s14 }
 0x1f5   : > { %s1274_s14 = smov %s973_s26  ;;  %s1275_s15 = smov %s885_s16 }
 0x1f6   : > { %s1276_s16 = smov %s1278_s20  ;;  %21 = sbr.rel (!%p19_p5) target bundleno = 8 (0x8), region = 101 }
 0x1fd   :  { %544 = vsyncpa [#allocation4], 1 }
 0x1fe   :  { %546 = vsyncpa [#allocation4 + $0x1], 1 }
 0x1ff   :  { %547 = vsyncpa [#allocation7], 1 }
 0x200   :  { %549 = vsyncpa [#allocation7 + $0x1], 1 }
 0x201   :  { %550 = vsyncpa [#allocation5], 1 }
 0x202   :  { %552 = vsyncpa [#allocation5 + $0x1], 1 }

</bundles_post_ra>
